<compile_context>
chip_gen: v6e
topology: v6e:2x2x1
jax: 0.10.0
libtpu: 0.0.40
codegen_flags: <defaults>
</compile_context>

<pallas_src>
import numpy as np
import jax
import jax.numpy as jnp
from jax import lax
from jax.experimental import pallas as pl
from jax.experimental.pallas import tpu as pltpu

# ---------------- model hyper-parameters (small, synthetic) ----------------
N, C_IN, H, W = 2, 4, 16, 16        # input  (NCHW)
C_OUT = 8                           # extractor conv output channels
NUM_CLASSES = 10                    # head output
KH = KW = 3                         # conv kernel
HW = H * W                          # 256 -> lane axis
KC = KH * KW * C_IN                 # im2col contraction dim = 36
KC_PAD = 48                         # KC rounded up to the bf16 sublane pack (16)
PAD_CLASSES = 128                   # lane-dense padded logits width


# ------------------------------- kernel ------------------------------------
def extractor_head_kernel(p_ref, w1_ref, b1_ref, w2_ref, b2_ref, o_ref):
    """One fused step over a block of `ipb` images.

    p_ref : (KC_PAD, ipb*HW)  bf16 im2col patches, batch flattened into lanes
    w1_ref: (C_OUT, KC_PAD)   bf16 conv weight in GEMM form (zero-padded K)
    b1_ref: (C_OUT, 1)        f32 conv bias
    w2_ref: (C_OUT, PAD)      bf16 head weight, classes zero-padded to 128
    b2_ref: (1, PAD)          f32 head bias, zero-padded
    o_ref : (ipb, PAD)        f32 padded logits
    """
    ipb = o_ref.shape[0]

    # ext conv: ONE un-batched GEMM over the whole block on the MXU.
    # bf16 operands, f32 accumulation.
    feat = jnp.dot(w1_ref[...], p_ref[...],
                   preferred_element_type=jnp.float32)        # (C_OUT, ipb*HW)

    # ext: bias + ReLU in f32 on the VPU (bias broadcasts across all lanes).
    feat = jnp.maximum(feat + b1_ref[...], 0.0)

    # ext: global average pool — per image, reduce its contiguous HW lane
    # chunk (static, 128-aligned slices; no reshape/relayout needed).
    # TODO(synk): for non-toy H*W, replace this unrolled loop with an
    # HW-chunked grid reduction axis + VMEM pooled accumulator.
    cols = [jnp.sum(feat[:, n * HW:(n + 1) * HW], axis=-1, keepdims=True)
            for n in range(ipb)]
    pooled = jnp.concatenate(cols, axis=-1) * (1.0 / HW)      # (C_OUT, ipb) f32

    # head: one (ipb, C_OUT) x (C_OUT, PAD) bf16 GEMM for the whole block,
    # f32 accumulation, then f32 bias add.  PAD=128 keeps the output store a
    # single unmasked lane-dense vst.
    logits = jnp.einsum("cn,cp->np", pooled.astype(jnp.bfloat16), w2_ref[...],
                        preferred_element_type=jnp.float32)   # (ipb, PAD)
    o_ref[...] = logits + b2_ref[...]


def extractor_head_pallas(patches, w1, b1, w2_pad, b2_pad, *, imgs_per_block=None):
    kc_pad, nhw = patches.shape
    n = nhw // HW
    pad_classes = w2_pad.shape[1]

    # One fused step covers all images at this toy size.  For large N, pick
    # imgs_per_block from a VMEM budget (<= ~48 MiB on v7x, larger on v6e/v5e
    # after raising vmem_limit_bytes) and keep >= 2 parallel grid steps so
    # both v7x TensorCores get work.
    ipb = n if imgs_per_block is None else imgs_per_block
    # (8,128) block rule for the (ipb, 128) output block: either the whole
    # batch, or a multiple of 8 sublanes.
    assert ipb == n or ipb % 8 == 0, "imgs_per_block must equal N or be a multiple of 8"
    assert n % ipb == 0

    return pl.pallas_call(
        extractor_head_kernel,
        out_shape=jax.ShapeDtypeStruct((n, pad_classes), jnp.float32),
        grid_spec=pl.GridSpec(
            grid=(n // ipb,),
            in_specs=[
                pl.BlockSpec((kc_pad, ipb * HW), lambda i: (0, i)),
                pl.BlockSpec((C_OUT, kc_pad), lambda i: (0, 0)),
                pl.BlockSpec((C_OUT, 1), lambda i: (0, 0)),
                pl.BlockSpec((C_OUT, pad_classes), lambda i: (0, 0)),
                pl.BlockSpec((1, pad_classes), lambda i: (0, 0)),
            ],
            out_specs=pl.BlockSpec((ipb, pad_classes), lambda i: (i, 0)),
        ),
        compiler_params=pltpu.CompilerParams(
            dimension_semantics=("parallel",),
            # Explicit scoped VMEM limit: safe on all of v5e/v6e/v7x; raise
            # toward ~100 MiB on v5e/v6e when enlarging imgs_per_block.
            vmem_limit_bytes=32 * 1024 * 1024,
        ),
    )(patches, w1, b1, w2_pad, b2_pad)


# ------------------------------ glue / prep --------------------------------
def im2col_k_nhw(x_nchw):
    """NCHW -> (KC_PAD, N*HW) bf16 patches of the zero-padded input.

    Patch-row ordering is (kh, kw, cin) with cin innermost; it MUST stay in
    sync with flatten_conv_weight below (shared ordering contract).
    """
    n = x_nchw.shape[0]
    x_nhwc = jnp.transpose(x_nchw, (0, 2, 3, 1))                 # (N,H,W,Cin)
    x_pad = jnp.pad(x_nhwc, ((0, 0), (1, 1), (1, 1), (0, 0)))
    cols = [x_pad[:, i:i + H, j:j + W, :]
            for i in range(KH) for j in range(KW)]               # 9 x (N,H,W,Cin)
    patches = jnp.stack(cols, axis=1)                            # (N,9,H,W,Cin)
    patches = jnp.transpose(patches, (0, 1, 4, 2, 3))            # (N,9,Cin,H,W)
    patches = patches.reshape(n, KC, HW)                         # (N,KC,HW)
    patches = jnp.transpose(patches, (1, 0, 2)).reshape(KC, n * HW)
    out = jnp.zeros((KC_PAD, n * HW), jnp.float32).at[:KC, :].set(patches)
    return out.astype(jnp.bfloat16)


def flatten_conv_weight(w_conv):
    """OIHW -> (C_OUT, KC_PAD) bf16 with (kh, kw, cin) ordering (matches im2col)."""
    w = jnp.transpose(w_conv, (0, 2, 3, 1)).reshape(C_OUT, KC)
    w = jnp.zeros((C_OUT, KC_PAD), jnp.float32).at[:, :KC].set(w)
    return w.astype(jnp.bfloat16)


def reference_forward(x_nchw, w_conv, b_conv, w_lin, b_lin):
    """Pure-JAX f32 reference matching the PyTorch module semantics."""
    x_nhwc = jnp.transpose(x_nchw, (0, 2, 3, 1))
    w_hwio = jnp.transpose(w_conv, (2, 3, 1, 0))                 # (kh,kw,Cin,Cout)
    feat = lax.conv_general_dilated(
        x_nhwc, w_hwio, window_strides=(1, 1), padding="SAME",
        dimension_numbers=("NHWC", "HWIO", "NHWC"))
    feat = jnp.maximum(feat + b_conv[None, None, None, :], 0.0)
    pooled = jnp.mean(feat, axis=(1, 2))                         # (N, C_OUT)
    return pooled @ w_lin.T + b_lin                              # (N, NUM_CLASSES)


# --------------------------------- main -------------------------------------
if __name__ == "__main__":
    key = jax.random.PRNGKey(0)
    k_x, k_w1, k_b1, k_w2, k_b2 = jax.random.split(key, 5)

    # deterministic synthetic parameters (PyTorch-shaped)
    x = jax.random.normal(k_x, (N, C_IN, H, W), dtype=jnp.float32)        # NCHW
    w_conv = jax.random.normal(k_w1, (C_OUT, C_IN, KH, KW),
                               dtype=jnp.float32) * 0.1                    # OIHW
    b_conv = jax.random.normal(k_b1, (C_OUT,), dtype=jnp.float32) * 0.1
    w_lin = jax.random.normal(k_w2, (NUM_CLASSES, C_OUT),
                              dtype=jnp.float32) * 0.1                     # (out,in)
    b_lin = jax.random.normal(k_b2, (NUM_CLASSES,), dtype=jnp.float32) * 0.1

    # --- GEMM-form params: bf16 MXU operands, f32 biases ---------------------
    patches = im2col_k_nhw(x)                                    # (KC_PAD, N*HW) bf16
    w1 = flatten_conv_weight(w_conv)                             # (C_OUT, KC_PAD) bf16
    b1 = b_conv.reshape(C_OUT, 1)                                # f32
    w2_pad = jnp.zeros((C_OUT, PAD_CLASSES), jnp.float32)
    w2_pad = w2_pad.at[:, :NUM_CLASSES].set(w_lin.T).astype(jnp.bfloat16)  # (C_OUT,128)
    b2_pad = jnp.zeros((1, PAD_CLASSES), jnp.float32)
    b2_pad = b2_pad.at[0, :NUM_CLASSES].set(b_lin)               # (1, 128) f32

    out_pad = extractor_head_pallas(patches, w1, b1, w2_pad, b2_pad)
    out_pad = jax.block_until_ready(out_pad)
    out = out_pad[:, :NUM_CLASSES]                               # (N, 10)

    ref = reference_forward(x, w_conv, b_conv, w_lin, b_lin)
    # bf16 MXU operands -> loosen tolerance vs. the f32 reference.
    np.testing.assert_allclose(np.asarray(out), np.asarray(ref),
                               rtol=2e-2, atol=1e-2)

    print("KERNEL_OK")
</pallas_src>

<mosaic_0001>
module attributes {stable_mosaic.version = 11 : i64} {
  func.func @extractor_head_kernel(%arg0: i32, %arg1: memref<48x512xbf16, #tpu.memory_space<vmem>>, %arg2: memref<8x48xbf16, #tpu.memory_space<vmem>>, %arg3: memref<8x1xf32, #tpu.memory_space<vmem>>, %arg4: memref<8x128xbf16, #tpu.memory_space<vmem>>, %arg5: memref<1x128xf32, #tpu.memory_space<vmem>>, %arg6: memref<2x128xf32, #tpu.memory_space<vmem>>) attributes {dimension_semantics = [#tpu.dimension_semantics<parallel>], iteration_bounds = array<i64: 1>, scalar_prefetch = 0 : i64, scratch_operands = 0 : i64, tpu.core_type = #tpu.core_type<tc>, window_params = [{transform_indices = @transform_0, window_bounds = array<i64: 48, 512>}, {pipeline_mode = #tpu.pipeline_mode<synchronous>, transform_indices = @transform_1, window_bounds = array<i64: 8, 48>}, {pipeline_mode = #tpu.pipeline_mode<synchronous>, transform_indices = @transform_2, window_bounds = array<i64: 8, 1>}, {pipeline_mode = #tpu.pipeline_mode<synchronous>, transform_indices = @transform_3, window_bounds = array<i64: 8, 128>}, {pipeline_mode = #tpu.pipeline_mode<synchronous>, transform_indices = @transform_4, window_bounds = array<i64: 1, 128>}, {transform_indices = @transform_5, window_bounds = array<i64: 2, 128>}]} {
    %c0 = arith.constant 0 : index
    %c0_0 = arith.constant 0 : index
    %0 = vector.load %arg2[%c0, %c0_0] : memref<8x48xbf16, #tpu.memory_space<vmem>>, vector<8x48xbf16>
    %c0_1 = arith.constant 0 : index
    %c0_2 = arith.constant 0 : index
    %1 = vector.load %arg1[%c0_1, %c0_2] : memref<48x512xbf16, #tpu.memory_space<vmem>>, vector<48x512xbf16>
    %cst = arith.constant dense<0.000000e+00> : vector<8x512xf32>
    %2 = tpu.matmul %0, %1, %cst {dimension_numbers = #tpu.dot_dimension_numbers<[1], [0], [0], [1], [0, 0, 1, 1], [], []>} : vector<8x48xbf16>, vector<48x512xbf16>, vector<8x512xf32> -> vector<8x512xf32>
    %c0_3 = arith.constant 0 : index
    %c0_4 = arith.constant 0 : index
    %3 = vector.load %arg3[%c0_3, %c0_4] : memref<8x1xf32, #tpu.memory_space<vmem>>, vector<8x1xf32>
    %4 = vector.broadcast %3 : vector<8x1xf32> to vector<8x512xf32>
    %5 = arith.addf %2, %4 : vector<8x512xf32>
    %cst_5 = arith.constant 0.000000e+00 : f32
    %6 = vector.broadcast %cst_5 : f32 to vector<8x512xf32>
    %7 = arith.maximumf %5, %6 : vector<8x512xf32>
    %8 = vector.extract_strided_slice %7 {offsets = [0, 0], sizes = [8, 256], strides = [1, 1]} : vector<8x512xf32> to vector<8x256xf32>
    %cst_6 = arith.constant dense<0.000000e+00> : vector<8xf32>
    %9 = vector.multi_reduction <add>, %8, %cst_6 [1] : vector<8x256xf32> to vector<8xf32>
    %10 = vector.shape_cast %9 : vector<8xf32> to vector<8x1xf32>
    %11 = vector.extract_strided_slice %7 {offsets = [0, 256], sizes = [8, 256], strides = [1, 1]} : vector<8x512xf32> to vector<8x256xf32>
    %cst_7 = arith.constant dense<0.000000e+00> : vector<8xf32>
    %12 = vector.multi_reduction <add>, %11, %cst_7 [1] : vector<8x256xf32> to vector<8xf32>
    %13 = vector.shape_cast %12 : vector<8xf32> to vector<8x1xf32>
    %14 = tpu.concatenate %10, %13 in 1 : vector<8x1xf32>, vector<8x1xf32> -> vector<8x2xf32>
    %cst_8 = arith.constant 3.906250e-03 : f32
    %15 = vector.broadcast %cst_8 : f32 to vector<8x2xf32>
    %16 = arith.mulf %14, %15 : vector<8x2xf32>
    %17 = arith.truncf %16 : vector<8x2xf32> to vector<8x2xbf16>
    %c0_9 = arith.constant 0 : index
    %c0_10 = arith.constant 0 : index
    %18 = vector.load %arg4[%c0_9, %c0_10] : memref<8x128xbf16, #tpu.memory_space<vmem>>, vector<8x128xbf16>
    "tpu.trace_start"() <{level = 10 : i32, message = "cn,cp->np"}> : () -> ()
    %cst_11 = arith.constant dense<0.000000e+00> : vector<2x128xf32>
    %19 = tpu.matmul %17, %18, %cst_11 {dimension_numbers = #tpu.dot_dimension_numbers<[0], [0], [1], [1], [0, 1, 1, 1], [], []>} : vector<8x2xbf16>, vector<8x128xbf16>, vector<2x128xf32> -> vector<2x128xf32>
    "tpu.trace_stop"() : () -> ()
    %c0_12 = arith.constant 0 : index
    %c0_13 = arith.constant 0 : index
    %20 = vector.load %arg5[%c0_12, %c0_13] : memref<1x128xf32, #tpu.memory_space<vmem>>, vector<1x128xf32>
    %21 = vector.broadcast %20 : vector<1x128xf32> to vector<2x128xf32>
    %22 = arith.addf %19, %21 : vector<2x128xf32>
    %c0_14 = arith.constant 0 : index
    %c0_15 = arith.constant 0 : index
    %23 = vector.load %arg6[%c0_14, %c0_15] : memref<2x128xf32, #tpu.memory_space<vmem>>, vector<2x128xf32>
    tpu.vector_store %arg6[%c0_14, %c0_15], %22 {strides = array<i32>} : memref<2x128xf32, #tpu.memory_space<vmem>>, vector<2x128xf32>,
    return
  }
  func.func @transform_0(%arg0: i32) -> (i32, i32) {
    %c0_i32 = arith.constant 0 : i32
    %c0_i32_0 = arith.constant 0 : i32
    return %c0_i32, %arg0 : i32, i32
  }
  func.func @transform_1(%arg0: i32) -> (i32, i32) {
    %c0_i32 = arith.constant 0 : i32
    %c0_i32_0 = arith.constant 0 : i32
    %c0_i32_1 = arith.constant 0 : i32
    return %c0_i32, %c0_i32_0 : i32, i32
  }
  func.func @transform_2(%arg0: i32) -> (i32, i32) {
    %c0_i32 = arith.constant 0 : i32
    %c0_i32_0 = arith.constant 0 : i32
    %c0_i32_1 = arith.constant 0 : i32
    return %c0_i32, %c0_i32_0 : i32, i32
  }
  func.func @transform_3(%arg0: i32) -> (i32, i32) {
    %c0_i32 = arith.constant 0 : i32
    %c0_i32_0 = arith.constant 0 : i32
    %c0_i32_1 = arith.constant 0 : i32
    return %c0_i32, %c0_i32_0 : i32, i32
  }
  func.func @transform_4(%arg0: i32) -> (i32, i32) {
    %c0_i32 = arith.constant 0 : i32
    %c0_i32_0 = arith.constant 0 : i32
    %c0_i32_1 = arith.constant 0 : i32
    return %c0_i32, %c0_i32_0 : i32, i32
  }
  func.func @transform_5(%arg0: i32) -> (i32, i32) {
    %c0_i32 = arith.constant 0 : i32
    %c0_i32_0 = arith.constant 0 : i32
    return %arg0, %c0_i32 : i32, i32
  }
}

</mosaic_0001>

<bundles_post_ra>
// kernel: tpu_custom_call.1
= control target key start
LH: loop header
LB: loop body
LE: loop exit
PB: predicated region body
PF: predicated region fallthrough
CT: control target
= control target key end

     0   :  { %10 = vsyncpa [#allocation3], 0  ;;  %s452_s0 = inlined_call_operand.hbm [shape: bf16[48,512], index: 0, kind: input, shape index: {}]   ;;  %s453_s1 = inlined_call_operand.vmem [shape: bf16[8,48], index: 1, kind: input, shape index: {}]   ;;  %s454_s2 = inlined_call_operand.vmem [shape: f32[8,1], index: 2, kind: input, shape index: {}]   ;;  %s455_s3 = inlined_call_operand.vmem [shape: bf16[8,128], index: 3, kind: input, shape index: {}]   ;;  %s456_s4 = inlined_call_operand.vmem [shape: f32[1,128], index: 4, kind: input, shape index: {}]   ;;  %s457_s5 = inlined_call_operand.hbm [shape: f32[2,128], index: 5, kind: output, shape index: {}]  }
   0x1   :  { %11 = vsyncpa [#allocation4], 0  ;;  %s397_s18 = smov [#allocation2]  }
   0x2   :  { %s17_s19 = sshll.u32 %s397_s18, 4  ;;  %s18_s19 = int_to_ptr.vmem [resolvable:$true] %s17_s19 }
   0x3   :  { %s361_s20 = scalar_lea.vmem %s18_s19, 1536  ;;  %p366_p1 = scmp.lt.s32.totalorder %s18_s19, %s18_s19 }
   0x4   :  { %p362_p0 = scmp.ne.s32.totalorder %s18_s19, %s361_s20  ;;  %p367_p2 = scmp.lt.s32.totalorder %s361_s20, %s361_s20 }
   0x6   :  { %p368_p3 = por %p367_p2, %p366_p1 }
   0x8   :  { %p369_p4 = pnand %p368_p3, %p362_p0 }
   0xa   :  { %372 = shalt.err (!%p369_p4)
}
   0xb   :  { %s398_s21 = smov 256   ;;  %s399_s22 = smov 16  }
   0xc   :  { %23 = dma.hbm_to_vmem [thread:$0]  %s452_s0, 1536, %s18_s19, [#allocation3], %s398_s21, %s398_s21, %s399_s22  }
   0xd   :  { %393 = dma.done.wait [#allocation3], 1536  }
   0xe   :  { %394 = vsyncadd [#allocation3], 4294965760  ;;  %v400_v0 = vmov 0   ;;  %v335_v1 = vld [vmem:[#allocation2 + $0x44] ss:$16 sps:$4 sm:$0xff]   ;;  %vm115_vm0 = vcmask 392192  }
   0xf   :  { %151 = vmatprep.mubr.bf16.mxu0 %v400_v0  ;;  %192 = vmatprep.mubr.bf16.mxu1 %v400_v0  ;;  %v337_v2 = vld [vmem:[#allocation2 + $0x4c] ss:$16 sps:$4 sm:$0xff]   ;;  %v339_v3 = vld [vmem:[#allocation2 + $0x40] ss:$16 sps:$4 sm:$0xff]   ;;  %v340_v4 = vld [vmem:[#allocation2 + $0x48] ss:$16 sps:$4 sm:$0xff]  }
  0x10   :  { %334 = vset.pattern.permute.xlu0 %v400_v0  ;;  %129 = vmatprep.subr.bf16.mxu0 %v335_v1  ;;  %v341_v5 = vld [vmem:[#allocation2 + $0x24] ss:$16 sps:$4 sm:$0xff]   ;;  %v343_v6 = vld [vmem:[#allocation2 + $0x2c] ss:$16 sps:$4 sm:$0xff]   ;;  %v345_v7 = vld [vmem:[#allocation2 + $0x20] ss:$16 sps:$4 sm:$0xff]  }
  0x11   :  { %170 = vmatprep.subr.bf16.mxu1 %v337_v2  ;;  %130 = vmatpush1.bf16.msra.mxu0 %v339_v3  ;;  %v346_v8 = vld [vmem:[#allocation2 + $0x28] ss:$16 sps:$4 sm:$0xff]   ;;  %v347_v9 = vld [vmem:[#allocation2 + $0x4] ss:$16 sps:$4 sm:$0xff]   ;;  %v349_v10 = vld [vmem:[#allocation2 + $0xc] ss:$16 sps:$4 sm:$0xff]  }
  0x12   :  { %171 = vmatpush1.bf16.msra.mxu1 %v340_v4  ;;  %131 = vmatprep.subr.bf16.mxu0 %v341_v5  ;;  %v351_v11 = vld [vmem:[#allocation2] ss:$16 sps:$4 sm:$0xff]   ;;  %v352_v12 = vld [vmem:[#allocation2 + $0x8] ss:$16 sps:$4 sm:$0xff]   ;;  %vm243_vm1 = vcmask 1043456   ;;  %v401_v35 = vmov 0.0  }
  0x13   :  { %172 = vmatprep.subr.bf16.mxu1 %v343_v6  ;;  %v49_v13 = vld [vmem:[%s454_s2] sm:$0xff]  ;;  %vm402_vm2 = vmmov 0   ;;  %vm211_vm3 = vcmask 7168   ;;  %vm239_vm4 = vcmask 64512  }
  0x14   :  { %52 = vperm.xlu0 %334, %v49_v13   ;;  %v36_v14 = vld [vmem:[%s453_s1] sm:$0xf] }
  0x15   :  { %132 = vmatpush1.bf16.msra.mxu0 %v345_v7  ;;  %v215_v34 = vld [vmem:[%s455_s3] sm:$0xf]  ;;  %s403_s3 = smov [#allocation5]  }
  0x16   :  { %173 = vmatpush1.bf16.msra.mxu1 %v346_v8  ;;  %133 = vmatprep.subr.bf16.mxu0 %v347_v9  ;;  %v245_v36 = vsel %vm243_vm1, %v215_v34, 0  ;;  %v317_v43 = vld [vmem:[%s456_s4] ss:$0 sm:$0xff]  ;;  %s294_s30 = sshll.u32 %s403_s3, 4  ;;  %s295_s30 = int_to_ptr.vmem [resolvable:$true] %s294_s30 }
  0x17   :  { %174 = vmatprep.subr.bf16.mxu1 %v349_v10  ;;  %s373_s6 = scalar_lea.vmem %s295_s30, 32  ;;  %p378_p6 = scmp.lt.s32.totalorder %s295_s30, %s295_s30 }
  0x18   :  { %p374_p5 = scmp.ne.s32.totalorder %s295_s30, %s373_s6  ;;  %p379_p7 = scmp.lt.s32.totalorder %s373_s6, %s373_s6 }
  0x19   :  { %134 = vmatpush1.bf16.msra.mxu0 %v351_v11 }
  0x1a   :  { %175 = vmatpush1.bf16.msra.mxu1 %v352_v12  ;;  %321 = vmatprep.subr.bf16.mxu0 %v401_v35  ;;  %p380_p8 = por %p379_p7, %p378_p6 }
  0x1c   :  { %315 = vmatmul.mubr.msk.bf16.vlgmr.msra.gmra.mxu0 %vm115_vm0, %v36_v14  ;;  %p381_p9 = pnand %p380_p8, %p374_p5 }
  0x1d   :  { %316 = vmatmul.mubr.msk.bf16.vlgmr.msra.gmra.mxu1 %vm115_vm0, %v36_v14  ;;  %323 = vmatprep.mubr.msk.bf16.mxu0 %vm402_vm2, %v401_v35 }
  0x1e   :  { %322 = vmatpush3.bf16.msra.mxu0 %v245_v36 }
  0x8f   :  { %v53_v15 = vpop.permute.xlu0 %52 }
  0xdc   :  { %v153_v16 = vpop.f32.mrf.mxu0 }
  0xdd   :  { %v194_v17 = vpop.f32.mrf.mxu1  ;;  %v154_v18 = vadd.f32 %v153_v16, %v53_v15 }
  0xde   :  { %v195_v19 = vadd.f32 %v194_v17, %v53_v15  ;;  %v155_v20 = vpop.f32.mrf.mxu0 }
  0xdf   :  { %v196_v21 = vpop.f32.mrf.mxu1  ;;  %v156_v22 = vadd.f32 %v155_v20, %v53_v15  ;;  %v201_v26 = vmax.f32 %v154_v18, 0.0 }
  0xe0   :  { %v197_v23 = vadd.f32 %v196_v21, %v53_v15  ;;  %v157_v24 = vpop.f32.mrf.mxu0  ;;  %v203_v27 = vmax.f32 %v195_v19, 0.0 }
  0xe1   :  { %v198_v25 = vpop.f32.mrf.mxu1  ;;  %v202_v28 = vmax.f32 %v156_v22, 0.0 }
  0xe2   :  { %v204_v29 = vmax.f32 %v197_v23, 0.0  ;;  %v158_v30 = vpop.f32.mrf.mxu0 }
  0xe3   :  { %v199_v31 = vpop.f32.mrf.mxu1  ;;  %v205_v33 = vadd.f32 %v202_v28, %v201_v26 }
  0xe4   :  { %v208_v32 = vadd.f32 %v204_v29, %v203_v27 }
  0xe5   :  { %206 = vadd.xlane.f32.xlu0 %v205_v33 }
  0xe6   :  { %209 = vadd.xlane.f32.xlu1 %v208_v32 }
 0x16e   :  { %v207_v38 = vpop.xlane.xlu0 %206 }
 0x16f   :  { %v210_v37 = vpop.xlane.xlu1 %209 }
 0x170   :  { %v212_v39 = vsel %vm211_vm3, %v207_v38, %v210_v37 }
 0x171   :  { %v213_v40 = vmul.f32 0.00390625, %v212_v39 }
 0x173   :  { %v214_v41 = vpack.c.bf16 %v213_v40, %v213_v40 }
 0x175   :  { %223 = vxpose.xlu1.c.b16.start.end [1/1] (short) (narrow) %v214_v41, 16 }
 0x1d7   :  { %v231_v42 = vpop.trf.xlu1 }
 0x1d8   :  { %324 = vmatmul.mubr.msk.bf16.vlgmr.msra.gmra.mxu0 %vm239_vm4, %v231_v42 }
 0x298   :  { %v281_v44 = vpop.f32.mrf.mxu0 }
 0x299   :  { %v282_v45 = vadd.f32 %v317_v43, %v281_v44 }
 0x29a   :  { %v325_v46 = vpop.f32.mrf.mxu0 }
 0x29b   :  { %287 = vst [vmem:[#allocation5] sm:$0x3] %v282_v45 }
 0x29c   :  { %v284_v47 = vpop.f32.mrf.mxu0 }
 0x29d   :  { %384 = shalt.err (!%p381_p9)
}
 0x29e   :  { %297 = dma.vmem_to_hbm [thread:$0]  %s295_s30, 32, %s457_s5, [#allocation4]   ;;  %v326_v48 = vpop.f32.mrf.mxu0 }
 0x29f   :  { %395 = dma.done.wait [#allocation4], 32  }
 0x2a0   :  { %396 = vsyncadd [#allocation4], 4294967264 }
 0x2a1   :  { %301 = vsyncpa [#allocation3], 1 }
 0x2a2   :  { %302 = vsyncpa [#allocation4], 1 }

</bundles_post_ra>
